<compile_context>
chip_gen: v6e
topology: v6e:2x2x1
jax: 0.10.0
libtpu: 0.0.40
codegen_flags: <defaults>
</compile_context>

<pallas_src>
import functools
import math

import jax
import jax.numpy as jnp
from jax.experimental import pallas as pl
from jax.experimental.pallas import tpu as pltpu


# ----------------------------------------------------------------------------
# "register_buffer" equivalent: build pe once, outside the kernel.
# ----------------------------------------------------------------------------
def make_positional_encoding(d_model, max_len=500, dtype=jnp.float32):
    assert d_model % 2 == 0, "PositionalEncoding requires an even d_model"
    position = jnp.arange(max_len, dtype=jnp.float32)[:, None]           # (L, 1)
    div_term = jnp.exp(
        jnp.arange(0, d_model, 2, dtype=jnp.float32)
        * (-math.log(10000.0) / d_model)
    )                                                                     # (D/2,)
    angles = position * div_term                                          # (L, D/2)
    pe = jnp.zeros((max_len, d_model), dtype=jnp.float32)
    pe = pe.at[:, 0::2].set(jnp.sin(angles))
    pe = pe.at[:, 1::2].set(jnp.cos(angles))
    # torch: pe.unsqueeze(0).transpose(0, 1) -> (max_len, 1, d_model)
    return pe[:, None, :].astype(dtype)


# ----------------------------------------------------------------------------
# Kernel: x block (tile_seq, batch*d_model) += pe block (tile_seq, d_model)
# lane-tiled `batch` times.  Pure VPU add; the tile is cheap XLU/VPU filler.
# ----------------------------------------------------------------------------
def _pe_add_kernel(x_ref, pe_ref, o_ref, *, batch):
    pe_blk = pe_ref[...]                                  # (tile_seq, d_model)
    if batch > 1:
        pe_blk = jnp.concatenate([pe_blk] * batch, axis=-1)  # (tile_seq, batch*d)
    o_ref[...] = (x_ref[...] + pe_blk).astype(o_ref.dtype)


def _round_up(n, m):
    return ((n + m - 1) // m) * m


def _num_tensorcores():
    """Best-effort TensorCores-per-chip query (2 on v7x-class); defaults to 1."""
    try:
        info = pltpu.get_tpu_info()
        for name in ("num_cores", "tensor_cores", "cores_per_chip",
                     "num_tensorcores", "tensorcores_per_chip"):
            n = getattr(info, name, None)
            if n:
                return int(n)
    except Exception:
        pass
    try:
        d = jax.devices()[0]
        for name in ("num_cores", "core_count"):
            n = getattr(d, name, None)
            if n:
                return int(n)
    except Exception:
        pass
    return 1


def positional_encoding(x, pe, *, vmem_tile_budget_bytes=8 << 20, donate_x=False):
    """x: (seq, batch, d_model); pe: (max_len, 1, d_model).  dropout p=0 -> identity."""
    seq, batch, d_model = x.shape
    assert pe.shape[0] >= seq and pe.shape[2] == d_model

    # Dense 2D pe slice, dtype-matched to x (halves pe DMA for bf16 models and
    # avoids an in-kernel promote/demote on v5e, which has no bf16 VPU).
    pe_s = pe[:seq, 0, :].astype(x.dtype)                # (seq, d_model)

    # Collapse (batch, d_model) -> one lane axis.  Free, contiguous reshape in
    # the wrapper; seq becomes the (large, dense) sublane axis.
    bd = batch * d_model
    xf = x.reshape(seq, bd)

    # --- tile sizing with (sublane, lane) padding-aware VMEM accounting --------
    item = jnp.dtype(x.dtype).itemsize
    sub = {4: 8, 2: 16, 1: 32}.get(item, 8)              # sublane packing per dtype
    pad_bd = _round_up(bd, 128)                          # lane padding of x/out
    pad_d = _round_up(d_model, 128)                      # lane padding of pe
    # Per padded seq row, double-buffered: x in + out (2x2 copies) + pe (2 copies).
    per_row = 4 * pad_bd * item + 2 * pad_d * item

    if seq <= sub:
        tile_seq = seq                                   # full-extent block is legal
    else:
        tile_seq = int(max(sub, min(_round_up(seq, sub),
                                    vmem_tile_budget_bytes // max(per_row, 1))))
        tile_seq = max(sub, (tile_seq // sub) * sub)

        # Megacore (v7x): prefer an even, balanced number of grid steps so both
        # TensorCores get equal work.  Single-TC chips keep a 1-step grid when
        # the whole tensor fits one tile (no pointless per-step overhead).
        if _num_tensorcores() >= 2:
            steps = max(pl.cdiv(seq, tile_seq), 2)
            if steps % 2:
                steps += 1
            tile_seq = max(sub, _round_up(pl.cdiv(seq, steps), sub))

    grid = (pl.cdiv(seq, tile_seq),)

    # Actual per-step footprint (padded + double-buffered) -> VMEM limit with
    # headroom; safe against v7x's 64 MiB physical VMEM for sane shapes.
    footprint = _round_up(tile_seq, sub) * per_row
    vmem_limit = int(max(32 << 20, footprint + (8 << 20)))

    kernel = functools.partial(_pe_add_kernel, batch=batch)
    out = pl.pallas_call(
        kernel,
        out_shape=jax.ShapeDtypeStruct((seq, bd), x.dtype),
        grid_spec=pltpu.PrefetchScalarGridSpec(
            num_scalar_prefetch=0,
            grid=grid,
            in_specs=[
                pl.BlockSpec((tile_seq, bd), lambda i: (i, 0)),
                pl.BlockSpec((tile_seq, d_model), lambda i: (i, 0)),
            ],
            out_specs=pl.BlockSpec((tile_seq, bd), lambda i: (i, 0)),
        ),
        compiler_params=pltpu.CompilerParams(
            dimension_semantics=("parallel",),
            vmem_limit_bytes=vmem_limit,
        ),
        # In-place update of x when the caller donates its buffer (removes the
        # extra output allocation for this pure-streaming kernel).
        input_output_aliases=({0: 0} if donate_x else {}),
    )(xf, pe_s)

    # TODO(synk): module default dropout p=0 (identity).  For p>0 training-mode
    # dropout, draw the mask in-kernel (pltpu.prng_seed with a per-block seed
    # from pl.program_id + pltpu.stateful_bernoulli) rather than passing a mask
    # array (which would add ~50% HBM read traffic to a mem-bound kernel).
    return out.reshape(seq, batch, d_model)


if __name__ == "__main__":
    key = jax.random.PRNGKey(0)
    # Classic transformer layout: (seq_len, batch, d_model)
    seq, batch, d_model = 8, 2, 32
    max_len = 500

    x = jax.random.normal(key, (seq, batch, d_model), dtype=jnp.float32)
    pe = make_positional_encoding(d_model, max_len=max_len, dtype=jnp.float32)

    y = positional_encoding(x, pe)
    y = jax.block_until_ready(y)

    # Pure-JAX reference of the forward pass (dropout p=0 is identity).
    ref = x + pe[:seq]

    assert y.shape == x.shape
    assert jnp.allclose(y, ref, atol=1e-6, rtol=1e-6), float(jnp.max(jnp.abs(y - ref)))
    print("KERNEL_OK")
</pallas_src>

<mosaic_0001>
module attributes {stable_mosaic.version = 11 : i64} {
  func.func @_pe_add_kernel(%arg0: i32, %arg1: memref<8x64xf32, #tpu.memory_space<vmem>>, %arg2: memref<8x32xf32, #tpu.memory_space<vmem>>, %arg3: memref<8x64xf32, #tpu.memory_space<vmem>>) attributes {dimension_semantics = [#tpu.dimension_semantics<parallel>], iteration_bounds = array<i64: 1>, scalar_prefetch = 0 : i64, scratch_operands = 0 : i64, tpu.core_type = #tpu.core_type<tc>, window_params = [{transform_indices = @transform_0, window_bounds = array<i64: 8, 64>}, {transform_indices = @transform_1, window_bounds = array<i64: 8, 32>}, {transform_indices = @transform_2, window_bounds = array<i64: 8, 64>}]} {
    %c0 = arith.constant 0 : index
    %c0_0 = arith.constant 0 : index
    %0 = vector.load %arg2[%c0, %c0_0] : memref<8x32xf32, #tpu.memory_space<vmem>>, vector<8x32xf32>
    %1 = tpu.concatenate %0, %0 in 1 : vector<8x32xf32>, vector<8x32xf32> -> vector<8x64xf32>
    %c0_1 = arith.constant 0 : index
    %c0_2 = arith.constant 0 : index
    %2 = vector.load %arg1[%c0_1, %c0_2] : memref<8x64xf32, #tpu.memory_space<vmem>>, vector<8x64xf32>
    %3 = arith.addf %2, %1 : vector<8x64xf32>
    %c0_3 = arith.constant 0 : index
    %c0_4 = arith.constant 0 : index
    %4 = vector.load %arg3[%c0_3, %c0_4] : memref<8x64xf32, #tpu.memory_space<vmem>>, vector<8x64xf32>
    tpu.vector_store %arg3[%c0_3, %c0_4], %3 {strides = array<i32>} : memref<8x64xf32, #tpu.memory_space<vmem>>, vector<8x64xf32>,
    return
  }
  func.func @transform_0(%arg0: i32) -> (i32, i32) {
    %c0_i32 = arith.constant 0 : i32
    %c0_i32_0 = arith.constant 0 : i32
    return %arg0, %c0_i32 : i32, i32
  }
  func.func @transform_1(%arg0: i32) -> (i32, i32) {
    %c0_i32 = arith.constant 0 : i32
    %c0_i32_0 = arith.constant 0 : i32
    return %arg0, %c0_i32 : i32, i32
  }
  func.func @transform_2(%arg0: i32) -> (i32, i32) {
    %c0_i32 = arith.constant 0 : i32
    %c0_i32_0 = arith.constant 0 : i32
    return %arg0, %c0_i32 : i32, i32
  }
}

</mosaic_0001>

<bundles_post_ra>
// kernel: tpu_custom_call.1
= control target key start
LH: loop header
LB: loop body
LE: loop exit
PB: predicated region body
PF: predicated region fallthrough
CT: control target
= control target key end

     0   :  { %7 = vsyncpa [#allocation3], 0  ;;  %s161_s0 = inlined_call_operand.hbm [shape: f32[8,64], index: 0, kind: input, shape index: {}]   ;;  %s162_s1 = inlined_call_operand.hbm [shape: f32[8,32], index: 1, kind: input, shape index: {}]   ;;  %s163_s2 = inlined_call_operand.hbm [shape: f32[8,64], index: 2, kind: output, shape index: {}]  }
   0x1   :  { %8 = vsyncpa [#allocation6], 0 }
   0x2   :  { %9 = vsyncpa [#allocation4], 0  ;;  %s133_s9 = smov [#allocation2]   ;;  %s134_s11 = smov [#allocation5]  }
   0x3   :  { %s16_s10 = sshll.u32 %s133_s9, 4  ;;  %s26_s12 = sshll.u32 %s134_s11, 4  ;;  %s17_s10 = int_to_ptr.vmem [resolvable:$true] %s16_s10  ;;  %s27_s12 = int_to_ptr.vmem [resolvable:$true] %s26_s12 }
   0x4   :  { %s75_s13 = scalar_lea.vmem %s17_s10, 128  ;;  %p80_p1 = scmp.lt.s32.totalorder %s17_s10, %s17_s10 }
   0x5   :  { %p76_p0 = scmp.ne.s32.totalorder %s17_s10, %s75_s13  ;;  %p81_p2 = scmp.lt.s32.totalorder %s75_s13, %s75_s13 }
   0x7   :  { %p82_p3 = por %p81_p2, %p80_p1 }
   0x9   :  { %p83_p4 = pnand %p82_p3, %p76_p0 }
   0xb   :  { %86 = shalt.err (!%p83_p4)
}
   0xc   :  { %19 = dma.hbm_to_vmem [thread:$0]  %s161_s0, 128, %s17_s10, [#allocation3]  }
   0xd   :  { %s95_s16 = scalar_lea.vmem %s27_s12, 128  ;;  %p100_p6 = scmp.lt.s32.totalorder %s27_s12, %s27_s12 }
   0xe   :  { %p96_p5 = scmp.ne.s32.totalorder %s27_s12, %s95_s16  ;;  %p101_p7 = scmp.lt.s32.totalorder %s95_s16, %s95_s16 }
  0x10   :  { %p102_p8 = por %p101_p7, %p100_p6 }
  0x12   :  { %p103_p9 = pnand %p102_p8, %p96_p5 }
  0x14   :  { %106 = shalt.err (!%p103_p9)
}
  0x15   :  { %29 = dma.hbm_to_vmem [thread:$0]  %s162_s1, 128, %s27_s12, [#allocation6]  }
  0x16   :  { %127 = dma.done.wait [#allocation3], 128  }
  0x17   :  { %128 = vsyncadd [#allocation3], 4294967168 }
  0x18   :  { %129 = dma.done.wait [#allocation6], 128  }
  0x19   :  { %130 = vsyncadd [#allocation6], 4294967168  ;;  %v36_v0 = vld [vmem:[#allocation5] sm:$0xff]  ;;  %s135_s19 = smov 32   ;;  %vm41_vm0 = vcmask 261120   ;;  %v43_v1 = vld [vmem:[#allocation2] sm:$0xff] }
  0x1a   :  { %38 = vrot.lane.b32.xlu0 %v36_v0, %s135_s19  ;;  %s136_s0 = smov [#allocation7]   ;;  %vm45_vm1 = vcmask 523264  }
  0x1b   :  { %s53_s20 = sshll.u32 %s136_s0, 4  ;;  %s54_s20 = int_to_ptr.vmem [resolvable:$true] %s53_s20 }
  0x1c   :  { %s107_s21 = scalar_lea.vmem %s54_s20, 128  ;;  %p112_p11 = scmp.lt.s32.totalorder %s54_s20, %s54_s20 }
  0x1d   :  { %p108_p10 = scmp.ne.s32.totalorder %s54_s20, %s107_s21  ;;  %p113_p12 = scmp.lt.s32.totalorder %s107_s21, %s107_s21 }
  0x1f   :  { %p114_p13 = por %p113_p12, %p112_p11 }
  0x21   :  { %p115_p0 = pnand %p114_p13, %p108_p10 }
  0x8c   :  { %v39_v2 = vpop.permute.xlu0 %38 }
  0x8d   :  { %v42_v3 = vsel %vm41_vm0, %v36_v0, %v39_v2 }
  0x8e   :  { %v44_v4 = vadd.f32 %v43_v1, %v42_v3 }
  0x90   :  { %46 = vst.msk [vmem:[#allocation7] sm:$0xff] %vm45_vm1, %v44_v4 }
  0x91   :  { %118 = shalt.err (!%p115_p0)
}
  0x92   :  { %56 = dma.vmem_to_hbm [thread:$0]  %s54_s20, 128, %s163_s2, [#allocation4]  }
  0x93   :  { %131 = dma.done.wait [#allocation4], 128  }
  0x94   :  { %132 = vsyncadd [#allocation4], 4294967168 }
  0x95   :  { %60 = vsyncpa [#allocation3], 1 }
  0x96   :  { %61 = vsyncpa [#allocation6], 1 }
  0x97   :  { %62 = vsyncpa [#allocation4], 1 }

</bundles_post_ra>
